<compile_context>
chip_gen: v7x
topology: tpu7x:2x2x1
jax: 0.10.0
libtpu: 0.0.40
codegen_flags: <defaults>
</compile_context>

<pallas_src>
import jax
import jax.numpy as jnp
from jax.experimental import pallas as pl
from jax.experimental.pallas import tpu as pltpu


def _round_up(x, m):
    return ((x + m - 1) // m) * m


def _cdiv(a, b):
    return (a + b - 1) // b


def _discriminator_kernel(x_ref, w1_ref, b1_ref, w2_ref, b2_ref, out_ref):
    # Layer 1: Linear(obs_dim -> hidden). bf16 operands on the MXU, f32
    # accumulation; bias add + ReLU in f32 on the VPU (v5e VPU has no bf16).
    h = jnp.dot(x_ref[...], w1_ref[...], preferred_element_type=jnp.float32)
    h = jnp.maximum(h + b1_ref[...], 0.0)
    # Layer 2: Linear(hidden -> num_skills). Cast activations to bf16 for the
    # MXU, accumulate in f32, add f32 bias. Output last dim = S (compact).
    o = jnp.dot(h.astype(jnp.bfloat16), w2_ref[...],
                preferred_element_type=jnp.float32)
    out_ref[...] = (o + b2_ref[...]).astype(out_ref.dtype)


def discriminator_forward(x, w1, b1, w2, b2, *, block_b=2048,
                          min_pallas_batch=512):
    """x: (B, obs_dim); w1: (obs_dim, H); b1: (1, H); w2: (H, S); b2: (1, S).

    Returns logits of shape (B, S), matching relu(x @ w1 + b1) @ w2 + b2.
    """
    B, K = x.shape
    H, S = w2.shape

    # Small-batch escape hatch: launch overhead exceeds the work; let XLA fuse.
    if B < min_pallas_batch:
        return jnp.maximum(x @ w1 + b1, 0.0) @ w2 + b2

    # bf16 operands for the MXU (accumulation stays f32 inside the kernel).
    x_lo = x.astype(jnp.bfloat16)
    w1_lo = w1.astype(jnp.bfloat16)
    w2_lo = w2.astype(jnp.bfloat16)
    b1_f = b1.astype(jnp.float32)
    b2_f = b2.astype(jnp.float32)

    # Batch tiling: minimize padding, keep TB a multiple of 8 sublanes, and
    # (for v7x megacore) use at least 2 grid steps once the batch is big
    # enough that each half-tile is still large.
    n_tiles = _cdiv(B, block_b)
    if B >= 1024:
        n_tiles = max(n_tiles, 2)
    TB = _round_up(_cdiv(B, n_tiles), 8)
    B_pad = _round_up(B, TB)
    if B_pad != B:
        x_lo = jnp.pad(x_lo, ((0, B_pad - B), (0, 0)))
    grid = (B_pad // TB,)

    flops = 2 * B_pad * (K * H + H * S)
    bytes_accessed = (B_pad * K * 2 + K * H * 2 + H * 4
                      + H * S * 2 + S * 4 + B_pad * S * 4)

    out = pl.pallas_call(
        _discriminator_kernel,
        out_shape=jax.ShapeDtypeStruct((B_pad, S), jnp.float32),
        grid=grid,
        in_specs=[
            pl.BlockSpec((TB, K), lambda i: (i, 0)),   # x tile (pipelined)
            pl.BlockSpec((K, H), lambda i: (0, 0)),    # W1 resident in VMEM
            pl.BlockSpec((1, H), lambda i: (0, 0)),    # b1 resident
            pl.BlockSpec((H, S), lambda i: (0, 0)),    # W2 resident (compact)
            pl.BlockSpec((1, S), lambda i: (0, 0)),    # b2 resident (compact)
        ],
        out_specs=pl.BlockSpec((TB, S), lambda i: (i, 0)),  # compact writeback
        compiler_params=pltpu.CompilerParams(
            dimension_semantics=("parallel",),
        ),
        cost_estimate=pl.CostEstimate(
            flops=flops, transcendentals=0, bytes_accessed=bytes_accessed),
    )(x_lo, w1_lo, b1_f, w2_lo, b2_f)

    # Strip batch padding only (skills dim already compact).
    return out[:B]


def init_params(key, obs_dim, hidden, num_skills):
    """Deterministic PyTorch-style (uniform +/- 1/sqrt(fan_in)) init."""
    k1, k2, k3, k4 = jax.random.split(key, 4)
    bound1 = 1.0 / jnp.sqrt(obs_dim)
    bound2 = 1.0 / jnp.sqrt(hidden)
    w1 = jax.random.uniform(k1, (obs_dim, hidden), jnp.float32, -bound1, bound1)
    b1 = jax.random.uniform(k2, (1, hidden), jnp.float32, -bound1, bound1)
    w2 = jax.random.uniform(k3, (hidden, num_skills), jnp.float32, -bound2, bound2)
    b2 = jax.random.uniform(k4, (1, num_skills), jnp.float32, -bound2, bound2)
    return w1, b1, w2, b2


if __name__ == "__main__":
    key = jax.random.PRNGKey(0)
    obs_dim = 32       # prod(envs.single_observation_space.shape)
    hidden = 256       # hard-coded in the module
    num_skills = 10    # diayn ... skills_10

    k_x, k_p = jax.random.split(key)
    w1, b1, w2, b2 = init_params(k_p, obs_dim, hidden, num_skills)

    def ref_fwd(xs):
        return jnp.maximum(xs @ w1 + b1, 0.0) @ w2 + b2

    # 1) Small batch (default path -> plain JAX escape hatch), exact f32.
    x_small = jax.random.normal(k_x, (8, obs_dim), jnp.float32)
    out_small = jax.block_until_ready(
        discriminator_forward(x_small, w1, b1, w2, b2))
    assert out_small.shape == (8, num_skills)
    assert jnp.allclose(out_small, ref_fwd(x_small), atol=1e-4, rtol=1e-4)

    # 2) Force the Pallas kernel on a tiny batch (TB padded to 8 sublanes).
    out_small_pl = jax.block_until_ready(
        discriminator_forward(x_small, w1, b1, w2, b2, min_pallas_batch=0))
    assert out_small_pl.shape == (8, num_skills)
    assert jnp.allclose(out_small_pl, ref_fwd(x_small), atol=3e-2, rtol=3e-2)

    # 3) Awkward batch size through the kernel (pads 300 -> 304, not 512).
    x_mid = jax.random.normal(jax.random.PRNGKey(1), (300, obs_dim), jnp.float32)
    out_mid = jax.block_until_ready(
        discriminator_forward(x_mid, w1, b1, w2, b2, min_pallas_batch=0))
    assert out_mid.shape == (300, num_skills)
    assert jnp.allclose(out_mid, ref_fwd(x_mid), atol=3e-2, rtol=3e-2)

    # 4) Larger batch through the default Pallas path (>= 2 grid steps).
    x_big = jax.random.normal(jax.random.PRNGKey(2), (2048, obs_dim), jnp.float32)
    out_big = jax.block_until_ready(
        discriminator_forward(x_big, w1, b1, w2, b2))
    assert out_big.shape == (2048, num_skills)
    assert jnp.allclose(out_big, ref_fwd(x_big), atol=3e-2, rtol=3e-2)

    print("KERNEL_OK")
</pallas_src>

<mosaic_0001>
module attributes {stable_mosaic.version = 11 : i64} {
  func.func @_discriminator_kernel(%arg0: i32, %arg1: memref<8x32xbf16, #tpu.memory_space<vmem>>, %arg2: memref<32x256xbf16, #tpu.memory_space<vmem>>, %arg3: memref<1x256xf32, #tpu.memory_space<vmem>>, %arg4: memref<256x10xbf16, #tpu.memory_space<vmem>>, %arg5: memref<1x10xf32, #tpu.memory_space<vmem>>, %arg6: memref<8x10xf32, #tpu.memory_space<vmem>>) attributes {dimension_semantics = [#tpu.dimension_semantics<parallel>], iteration_bounds = array<i64: 1>, scalar_prefetch = 0 : i64, scratch_operands = 0 : i64, tpu.core_type = #tpu.core_type<tc>, window_params = [{transform_indices = @transform_0, window_bounds = array<i64: 8, 32>}, {pipeline_mode = #tpu.pipeline_mode<synchronous>, transform_indices = @transform_1, window_bounds = array<i64: 32, 256>}, {pipeline_mode = #tpu.pipeline_mode<synchronous>, transform_indices = @transform_2, window_bounds = array<i64: 1, 256>}, {pipeline_mode = #tpu.pipeline_mode<synchronous>, transform_indices = @transform_3, window_bounds = array<i64: 256, 10>}, {pipeline_mode = #tpu.pipeline_mode<synchronous>, transform_indices = @transform_4, window_bounds = array<i64: 1, 10>}, {transform_indices = @transform_5, window_bounds = array<i64: 8, 10>}]} {
    %c0 = arith.constant 0 : index
    %c0_0 = arith.constant 0 : index
    %0 = vector.load %arg1[%c0, %c0_0] : memref<8x32xbf16, #tpu.memory_space<vmem>>, vector<8x32xbf16>
    %c0_1 = arith.constant 0 : index
    %c0_2 = arith.constant 0 : index
    %1 = vector.load %arg2[%c0_1, %c0_2] : memref<32x256xbf16, #tpu.memory_space<vmem>>, vector<32x256xbf16>
    %cst = arith.constant dense<0.000000e+00> : vector<8x256xf32>
    %2 = tpu.matmul %0, %1, %cst {dimension_numbers = #tpu.dot_dimension_numbers<[1], [0], [0], [1], [0, 0, 1, 1], [], []>} : vector<8x32xbf16>, vector<32x256xbf16>, vector<8x256xf32> -> vector<8x256xf32>
    %c0_3 = arith.constant 0 : index
    %c0_4 = arith.constant 0 : index
    %3 = vector.load %arg3[%c0_3, %c0_4] : memref<1x256xf32, #tpu.memory_space<vmem>>, vector<1x256xf32>
    %4 = vector.broadcast %3 : vector<1x256xf32> to vector<8x256xf32>
    %5 = arith.addf %2, %4 : vector<8x256xf32>
    %cst_5 = arith.constant 0.000000e+00 : f32
    %6 = vector.broadcast %cst_5 : f32 to vector<8x256xf32>
    %7 = arith.maximumf %5, %6 : vector<8x256xf32>
    %8 = arith.truncf %7 : vector<8x256xf32> to vector<8x256xbf16>
    %c0_6 = arith.constant 0 : index
    %c0_7 = arith.constant 0 : index
    %9 = vector.load %arg4[%c0_6, %c0_7] : memref<256x10xbf16, #tpu.memory_space<vmem>>, vector<256x10xbf16>
    %cst_8 = arith.constant dense<0.000000e+00> : vector<8x10xf32>
    %10 = tpu.matmul %8, %9, %cst_8 {dimension_numbers = #tpu.dot_dimension_numbers<[1], [0], [0], [1], [0, 0, 1, 1], [], []>} : vector<8x256xbf16>, vector<256x10xbf16>, vector<8x10xf32> -> vector<8x10xf32>
    %c0_9 = arith.constant 0 : index
    %c0_10 = arith.constant 0 : index
    %11 = vector.load %arg5[%c0_9, %c0_10] : memref<1x10xf32, #tpu.memory_space<vmem>>, vector<1x10xf32>
    %12 = vector.broadcast %11 : vector<1x10xf32> to vector<8x10xf32>
    %13 = arith.addf %10, %12 : vector<8x10xf32>
    %c0_11 = arith.constant 0 : index
    %c0_12 = arith.constant 0 : index
    %14 = vector.load %arg6[%c0_11, %c0_12] : memref<8x10xf32, #tpu.memory_space<vmem>>, vector<8x10xf32>
    tpu.vector_store %arg6[%c0_11, %c0_12], %13 {strides = array<i32>} : memref<8x10xf32, #tpu.memory_space<vmem>>, vector<8x10xf32>,
    return
  }
  func.func @transform_0(%arg0: i32) -> (i32, i32) {
    %c0_i32 = arith.constant 0 : i32
    %c0_i32_0 = arith.constant 0 : i32
    return %arg0, %c0_i32 : i32, i32
  }
  func.func @transform_1(%arg0: i32) -> (i32, i32) {
    %c0_i32 = arith.constant 0 : i32
    %c0_i32_0 = arith.constant 0 : i32
    %c0_i32_1 = arith.constant 0 : i32
    return %c0_i32, %c0_i32_0 : i32, i32
  }
  func.func @transform_2(%arg0: i32) -> (i32, i32) {
    %c0_i32 = arith.constant 0 : i32
    %c0_i32_0 = arith.constant 0 : i32
    %c0_i32_1 = arith.constant 0 : i32
    return %c0_i32, %c0_i32_0 : i32, i32
  }
  func.func @transform_3(%arg0: i32) -> (i32, i32) {
    %c0_i32 = arith.constant 0 : i32
    %c0_i32_0 = arith.constant 0 : i32
    %c0_i32_1 = arith.constant 0 : i32
    return %c0_i32, %c0_i32_0 : i32, i32
  }
  func.func @transform_4(%arg0: i32) -> (i32, i32) {
    %c0_i32 = arith.constant 0 : i32
    %c0_i32_0 = arith.constant 0 : i32
    %c0_i32_1 = arith.constant 0 : i32
    return %c0_i32, %c0_i32_0 : i32, i32
  }
  func.func @transform_5(%arg0: i32) -> (i32, i32) {
    %c0_i32 = arith.constant 0 : i32
    %c0_i32_0 = arith.constant 0 : i32
    return %arg0, %c0_i32 : i32, i32
  }
}

</mosaic_0001>

<bundles_post_ra>
// kernel: tpu_custom_call.1
= control target key start
LH: loop header
LB: loop body
LE: loop exit
PB: predicated region body
PF: predicated region fallthrough
CT: control target
= control target key end

     0   :  { %v391_v2 = vmov 0   ;;  %vm59_vm0 = vcmask 261120   ;;  %s504_s0 = inlined_call_operand.vmem [shape: bf16[8,32], index: 0, kind: input, shape index: {}]   ;;  %s505_s1 = inlined_call_operand.vmem [shape: bf16[32,256], index: 1, kind: input, shape index: {}]   ;;  %s506_s2 = inlined_call_operand.vmem [shape: f32[1,256], index: 2, kind: input, shape index: {}]   ;;  %s507_s3 = inlined_call_operand.vmem [shape: bf16[256,10], index: 3, kind: input, shape index: {}]   ;;  %s508_s4 = inlined_call_operand.vmem [shape: f32[1,10], index: 4, kind: input, shape index: {}]   ;;  %s509_s5 = inlined_call_operand.hbm [shape: f32[8,10], index: 5, kind: output, shape index: {}]  }
   0x1   :  { %v345_v0 = vld [vmem:[%s505_s1 + $0x4] ss:$8 sps:$4 sm:$0xff]   ;;  %v347_v1 = vld [vmem:[%s505_s1] ss:$8 sps:$4 sm:$0xff]   ;;  %95 = vmatprep.mubr.bf16.mxu0 %v391_v2  ;;  %v348_v3 = vld [vmem:[%s505_s1 + $0x14] ss:$8 sps:$4 sm:$0xff]  }
   0x2   :  { %63 = vmatprep.subr.bf16.mxu0 %v345_v0  ;;  %v350_v4 = vld [vmem:[%s505_s1 + $0x10] ss:$8 sps:$4 sm:$0xff]   ;;  %v351_v5 = vld [vmem:[%s507_s3 + $0x40] sm:$0xff]   ;;  %v353_v8 = vld [vmem:[%s507_s3 + $0x48] sm:$0xff]  }
   0x3   :  { %64 = vmatpush1.bf16.msra.mxu0 %v347_v1  ;;  %v352_v6 = vld [vmem:[%s507_s3] sm:$0xff]   ;;  %321 = vmatprep.subr.bf16.mxu1 %v351_v5  ;;  %v354_v9 = vld [vmem:[%s507_s3 + $0x8] sm:$0xff]   ;;  %v355_v10 = vld [vmem:[%s507_s3 + $0x50] sm:$0xff]  }
   0x4   :  { %65 = vmatprep.subr.bf16.mxu0 %v348_v3  ;;  %v22_v7 = vld [vmem:[%s504_s0] sm:$0xf]  ;;  %322 = vmatpush3.bf16.msra.mxu1 %v352_v6  ;;  %v356_v11 = vld [vmem:[%s507_s3 + $0x10] sm:$0xff]   ;;  %v357_v12 = vld [vmem:[%s507_s3 + $0x58] sm:$0xff]  }
   0x5   :  { %323 = vmatprep.subr.bf16.mxu1 %v353_v8  ;;  %v358_v13 = vld [vmem:[%s507_s3 + $0x18] sm:$0xff]   ;;  %v359_v14 = vld [vmem:[%s507_s3 + $0x60] sm:$0xff]  }
   0x6   :  { %v360_v15 = vld [vmem:[%s507_s3 + $0x20] sm:$0xff]  }
   0x7   :  { %66 = vmatpush1.bf16.msra.mxu0 %v350_v4 }
   0x8   :  { %324 = vmatpush3.bf16.msra.mxu1 %v354_v9 }
   0x9   :  { %325 = vmatprep.subr.bf16.mxu1 %v355_v10 }
   0xa   :  { %303 = vmatmul.mubr.msk.bf16.vlgmr.msra.gmra.mrb[0].mxu0 %vm59_vm0, %v22_v7 }
   0xc   :  { %326 = vmatpush3.bf16.msra.mxu1 %v356_v11 }
   0xd   :  { %327 = vmatprep.subr.bf16.mxu1 %v357_v12 }
  0x10   :  { %328 = vmatpush3.bf16.msra.mxu1 %v358_v13 }
  0x11   :  { %10 = vsyncpa [#allocation3], 0  ;;  %329 = vmatprep.subr.bf16.mxu1 %v359_v14  ;;  %v361_v16 = vld [vmem:[%s507_s3 + $0x68] sm:$0xff]   ;;  %v363_v18 = vld [vmem:[%s507_s3 + $0x70] sm:$0xff]   ;;  %v29_v22 = vlaneseq  ;;  %vm283_vm1 = vcmask 80896  }
  0x12   :  { %v362_v17 = vld [vmem:[%s507_s3 + $0x28] sm:$0xff]   ;;  %v364_v19 = vld [vmem:[%s507_s3 + $0x30] sm:$0xff]   ;;  %v365_v20 = vld [vmem:[%s507_s3 + $0x78] sm:$0xff]  }
  0x13   :  { %v366_v21 = vld [vmem:[%s507_s3 + $0x38] sm:$0xff]   ;;  %v30_v23 = vshrl.u32 %v29_v22, 7  ;;  %v27_v25 = vld [vmem:[%s506_s2] sm:$0x3]  ;;  %s392_s2 = smov [#allocation2]  }
  0x14   :  { %330 = vmatpush3.bf16.msra.mxu1 %v360_v15  ;;  %v304_v40 = vld [vmem:[%s508_s4] ss:$0 sm:$0xff]  ;;  %s291_s10 = sshll.u32 %s392_s2, 4  ;;  %s292_s10 = int_to_ptr.vmem [resolvable:$true] %s291_s10 }
  0x15   :  { %331 = vmatprep.subr.bf16.mxu1 %v361_v16  ;;  %v31_v24 = vsub.s32 0, %v30_v23  ;;  %v35_v26 = vsub.s32 1, %v30_v23  ;;  %s367_s11 = scalar_lea.vmem %s292_s10, 128  ;;  %p372_p1 = scmp.lt.s32.totalorder %s292_s10, %s292_s10 }
  0x16   :  { %p368_p0 = scmp.ne.s32.totalorder %s292_s10, %s367_s11  ;;  %p373_p2 = scmp.lt.s32.totalorder %s367_s11, %s367_s11 }
  0x17   :  { %v32_v27 = vrot.slane %v27_v25, %v31_v24  ;;  %v36_v28 = vrot.slane %v27_v25, %v35_v26 }
  0x18   :  { %332 = vmatpush3.bf16.msra.mxu1 %v362_v17  ;;  %p374_p3 = por %p373_p2, %p372_p1 }
  0x19   :  { %333 = vmatprep.subr.bf16.mxu1 %v363_v18 }
  0x1a   :  { %p375_p4 = pnand %p374_p3, %p368_p0 }
  0x1c   :  { %334 = vmatpush3.bf16.msra.mxu1 %v364_v19 }
  0x1d   :  { %335 = vmatprep.subr.bf16.mxu1 %v365_v20 }
  0x20   :  { %336 = vmatpush3.bf16.msra.mxu1 %v366_v21 }
  0xdd   :  { %v97_v29 = vpop.f32.mrb[0].mxu0 }
  0xde   :  { %v98_v30 = vadd.f32 %v97_v29, %v32_v27  ;;  %v99_v31 = vpop.f32.mrb[1].mxu0 }
  0xdf   :  { %v100_v32 = vadd.f32 %v99_v31, %v36_v28  ;;  %v101_v33 = vpop.f32.mrb[2].mxu0 }
  0xe0   :  { %v104_v34 = vmax.f32 %v98_v30, 0.0  ;;  %v102_v35 = vpop.f32.mrb[3].mxu0 }
  0xe1   :  { %v105_v36 = vmax.f32 %v100_v32, 0.0 }
  0xe2   :  { %v106_v38 = vpack.c.bf16 %v104_v34, %v104_v34 }
  0xe3   :  { %v107_v37 = vpack.c.bf16 %v105_v36, %v105_v36 }
  0xe5   :  { %275 = vmatprep.mubr.bf16.mxu1 %v107_v37 }
  0xe6   :  { %276 = vmatmul.mubr.bf16.vlgmr.msra.gmra.mrb[0].mxu1 %v106_v38 }
 0x1b9   :  { %v337_v39 = vpop.f32.mrb[0].mxu1 }
 0x1ba   :  { %v338_v41 = vpop.f32.mrb[1].mxu1 }
 0x1bb   :  { %v339_v42 = vadd.f32 %v338_v41, %v337_v39  ;;  %v340_v43 = vpop.f32.mrb[2].mxu1 }
 0x1bc   :  { %v341_v44 = vpop.f32.mrb[3].mxu1 }
 0x1bd   :  { %v278_v45 = vadd.f32 %v339_v42, %v304_v40 }
 0x1bf   :  { %284 = vst.msk [vmem:[#allocation2] sm:$0xff] %vm283_vm1, %v278_v45 }
 0x1c0   :  { %378 = shalt.err (!%p375_p4)
}
 0x1c1   :  { %s379_s4 = scalar_lea.hbm %s509_s5, 128 }
 0x1c2   :  { %p380_p5 = scmp.ne.s32.totalorder %s509_s5, %s379_s4  ;;  %p383_p6 = scmp.lt.u32.totalorder %s379_s4, %s509_s5 }
 0x1c4   :  { %p385_p7 = pnand %p383_p6, %p380_p5 }
 0x1c6   :  { %388 = shalt.err (!%p385_p7)
}
 0x1c7   :  { %294 = dma.vmem_to_hbm [thread:$0]  %s292_s10, 128, %s509_s5, [#allocation3]  }
 0x1c8   :  { %389 = dma.done.wait [#allocation3], 128  }
 0x1c9   :  { %390 = vsyncadd [#allocation3], 4294967168 }
 0x1ca   :  { %298 = vsyncpa [#allocation3], 1 }

</bundles_post_ra>
